<compile_context>
chip_gen: v6e
topology: v6e:2x2x1
jax: 0.10.0
libtpu: 0.0.40
codegen_flags: <defaults>
</compile_context>

<pallas_src>
import functools

import jax
import jax.numpy as jnp
from jax.experimental import pallas as pl
from jax.experimental.pallas import tpu as pltpu

STATE_DIM = 128
HIDDEN = 128
OUT_PAD = 128     # fc4 out=1 padded to 128 lanes for the MXU (only col 0 stored)
TB_MAX = 2048     # max batch-tile rows per grid step
SMALL_B = 128     # below this, skip pallas_call (launch overhead dominates)


def _round_up(n, m):
    return -(-n // m) * m


def _cdiv(a, b):
    return -(-a // b)


def _leaky_relu(x, slope=0.1):
    return jnp.where(x > 0, x, slope * x)


def value_net_kernel(x_ref, w1_ref, b1_ref, w2_ref, b2_ref,
                     w3_ref, b3_ref, w4_ref, b4_ref, o_ref):
    # bf16 operands -> MXU, f32 accumulation; bias add + LeakyReLU in f32 (VPU).
    x = x_ref[...].astype(jnp.bfloat16)

    h = jnp.dot(x, w1_ref[...], preferred_element_type=jnp.float32) + b1_ref[...]
    h = _leaky_relu(h)

    h = jnp.dot(h.astype(jnp.bfloat16), w2_ref[...],
                preferred_element_type=jnp.float32) + b2_ref[...]
    h = _leaky_relu(h)

    h = jnp.dot(h.astype(jnp.bfloat16), w3_ref[...],
                preferred_element_type=jnp.float32) + b3_ref[...]
    h = _leaky_relu(h)

    y = jnp.dot(h.astype(jnp.bfloat16), w4_ref[...],
                preferred_element_type=jnp.float32) + b4_ref[...]
    # Only the true fc4 column goes back to HBM; the other 127 lanes are the
    # zero padding used purely to keep the MXU operand 128-lane.
    o_ref[...] = y[:, :1].astype(o_ref.dtype)


def _pallas_forward(x, params):
    """Pallas path. x: (B, STATE_DIM) f32 -> (B, 1) f32."""
    w1, b1, w2, b2, w3, b3, w4, b4 = params
    B = x.shape[0]

    # Only pad when B < 8 (<= 7 rows, negligible); otherwise rely on Pallas'
    # masked ragged last tile so we never re-stream x through an XLA pad.
    if B < 8:
        x = jnp.pad(x, ((0, 8 - B), (0, 0)))
    b_rows = x.shape[0]

    # >= 2 tiles whenever possible (v7x megacore), capped at TB_MAX.
    tb = min(TB_MAX, max(8, _round_up(_cdiv(b_rows, 2), 8)))
    num_tiles = _cdiv(b_rows, tb)

    x_spec = pl.BlockSpec((tb, STATE_DIM), lambda i: (i, 0))
    o_spec = pl.BlockSpec((tb, 1), lambda i: (i, 0))   # last dim == full array dim
    # Constant block index across the grid -> weights/biases stay resident in
    # VMEM (no re-DMA per step).
    w_spec = lambda r, c: pl.BlockSpec((r, c), lambda i: (0, 0))

    # Honest advisory cost: real fc4 is 128 -> 1.
    flops = 2 * b_rows * HIDDEN * (STATE_DIM + HIDDEN + HIDDEN) + 2 * b_rows * HIDDEN
    bytes_accessed = (
        b_rows * STATE_DIM * 4                                  # x (f32 in)
        + b_rows * 4                                            # y column (f32 out)
        + (STATE_DIM * HIDDEN + 2 * HIDDEN * HIDDEN
           + HIDDEN * OUT_PAD) * 2                              # bf16 weights as stored
        + (3 * HIDDEN + OUT_PAD) * 4                            # f32 biases
    )

    y = pl.pallas_call(
        value_net_kernel,
        out_shape=jax.ShapeDtypeStruct((b_rows, 1), jnp.float32),
        grid=(num_tiles,),
        in_specs=[
            x_spec,
            w_spec(STATE_DIM, HIDDEN), w_spec(1, HIDDEN),
            w_spec(HIDDEN, HIDDEN),    w_spec(1, HIDDEN),
            w_spec(HIDDEN, HIDDEN),    w_spec(1, HIDDEN),
            w_spec(HIDDEN, OUT_PAD),   w_spec(1, OUT_PAD),
        ],
        out_specs=o_spec,
        compiler_params=pltpu.CompilerParams(
            dimension_semantics=("parallel",),
            vmem_limit_bytes=32 * 1024 * 1024,   # headroom over v5e's 16 MiB default
        ),
        cost_estimate=pl.CostEstimate(
            flops=flops, transcendentals=0, bytes_accessed=bytes_accessed),
    )(x, w1, b1, w2, b2, w3, b3, w4, b4)

    return y[:B]


def _jnp_forward(x, params):
    """Fused-XLA path for small batches (same bf16-operand / f32-accum math)."""
    w1, b1, w2, b2, w3, b3, w4, b4 = params

    def dot(a, w):
        return jnp.dot(a.astype(jnp.bfloat16), w,
                       preferred_element_type=jnp.float32)

    h = _leaky_relu(dot(x, w1) + b1)
    h = _leaky_relu(dot(h, w2) + b2)
    h = _leaky_relu(dot(h, w3) + b3)
    return (dot(h, w4) + b4)[:, :1]


@functools.partial(jax.jit, static_argnames=("force_pallas",))
def value_network_forward(x, params, force_pallas=False):
    """x: (B, STATE_DIM) float32.  Returns (B, 1), or (1,) if B == 1
    (matching torch's .squeeze(0))."""
    B = x.shape[0]
    if force_pallas or B >= SMALL_B:
        y = _pallas_forward(x, params)
    else:
        y = _jnp_forward(x, params)
    if y.shape[0] == 1:            # torch .squeeze(0): drops dim 0 only if size 1
        y = jnp.squeeze(y, axis=0)
    return y


def init_params(key):
    """Deterministic init mirroring nn.Linear default (U(-1/sqrt(fan_in), ...)).
    Weights stored as (in, out) in bf16 (MXU-native); biases in f32.
    fc4 padded to 128 output lanes with zeros (only column 0 is real)."""
    ks = jax.random.split(key, 8)

    def linear(kw, kb, fan_in, fan_out):
        bound = 1.0 / jnp.sqrt(float(fan_in))
        w = jax.random.uniform(kw, (fan_in, fan_out), jnp.float32, -bound, bound)
        b = jax.random.uniform(kb, (1, fan_out), jnp.float32, -bound, bound)
        return w.astype(jnp.bfloat16), b

    w1, b1 = linear(ks[0], ks[1], STATE_DIM, HIDDEN)
    w2, b2 = linear(ks[2], ks[3], HIDDEN, HIDDEN)
    w3, b3 = linear(ks[4], ks[5], HIDDEN, HIDDEN)
    w4_small, b4_small = linear(ks[6], ks[7], HIDDEN, 1)

    w4 = jnp.zeros((HIDDEN, OUT_PAD), jnp.bfloat16).at[:, :1].set(w4_small)
    b4 = jnp.zeros((1, OUT_PAD), jnp.float32).at[:, :1].set(b4_small)
    return (w1, b1, w2, b2, w3, b3, w4, b4)


def reference_forward(x, params):
    """Pure-JAX reference mirroring the kernel math (bf16 operands, f32 accum)."""
    y = _jnp_forward(x, params)
    if y.shape[0] == 1:
        y = jnp.squeeze(y, axis=0)
    return y


if __name__ == "__main__":
    key = jax.random.PRNGKey(0)
    kp, kx = jax.random.split(key)
    params = init_params(kp)

    # 1) Small batch, forced through the Pallas kernel path.
    B = 8
    x = jax.random.normal(kx, (B, STATE_DIM), jnp.float32)
    y = value_network_forward(x, params, force_pallas=True)
    jax.block_until_ready(y)
    y_ref = reference_forward(x, params)
    assert y.shape == (B, 1), y.shape
    assert jnp.allclose(y, y_ref, atol=1e-3, rtol=1e-3), "mismatch vs reference (B=8)"

    # 2) Ragged batch (not a multiple of the tile): exercises the masked tail tile.
    B2 = 11
    x2 = jax.random.normal(jax.random.fold_in(kx, 1), (B2, STATE_DIM), jnp.float32)
    y2 = value_network_forward(x2, params, force_pallas=True)
    jax.block_until_ready(y2)
    y2_ref = reference_forward(x2, params)
    assert y2.shape == (B2, 1), y2.shape
    assert jnp.allclose(y2, y2_ref, atol=1e-3, rtol=1e-3), "mismatch vs reference (B=11)"

    # 3) B == 1: torch .squeeze(0) semantics (small-B fused-XLA path).
    x3 = jax.random.normal(jax.random.fold_in(kx, 2), (1, STATE_DIM), jnp.float32)
    y3 = value_network_forward(x3, params)
    jax.block_until_ready(y3)
    assert y3.shape == (1,), y3.shape

    print("KERNEL_OK")
</pallas_src>

<mosaic_0001>
module attributes {stable_mosaic.version = 11 : i64} {
  func.func @value_net_kernel(%arg0: i32, %arg1: memref<8x128xf32, #tpu.memory_space<vmem>>, %arg2: memref<128x128xbf16, #tpu.memory_space<vmem>>, %arg3: memref<1x128xf32, #tpu.memory_space<vmem>>, %arg4: memref<128x128xbf16, #tpu.memory_space<vmem>>, %arg5: memref<1x128xf32, #tpu.memory_space<vmem>>, %arg6: memref<128x128xbf16, #tpu.memory_space<vmem>>, %arg7: memref<1x128xf32, #tpu.memory_space<vmem>>, %arg8: memref<128x128xbf16, #tpu.memory_space<vmem>>, %arg9: memref<1x128xf32, #tpu.memory_space<vmem>>, %arg10: memref<8x1xf32, #tpu.memory_space<vmem>>) attributes {dimension_semantics = [#tpu.dimension_semantics<parallel>], iteration_bounds = array<i64: 1>, scalar_prefetch = 0 : i64, scratch_operands = 0 : i64, tpu.core_type = #tpu.core_type<tc>, window_params = [{transform_indices = @transform_0, window_bounds = array<i64: 8, 128>}, {pipeline_mode = #tpu.pipeline_mode<synchronous>, transform_indices = @transform_1, window_bounds = array<i64: 128, 128>}, {pipeline_mode = #tpu.pipeline_mode<synchronous>, transform_indices = @transform_2, window_bounds = array<i64: 1, 128>}, {pipeline_mode = #tpu.pipeline_mode<synchronous>, transform_indices = @transform_3, window_bounds = array<i64: 128, 128>}, {pipeline_mode = #tpu.pipeline_mode<synchronous>, transform_indices = @transform_4, window_bounds = array<i64: 1, 128>}, {pipeline_mode = #tpu.pipeline_mode<synchronous>, transform_indices = @transform_5, window_bounds = array<i64: 128, 128>}, {pipeline_mode = #tpu.pipeline_mode<synchronous>, transform_indices = @transform_6, window_bounds = array<i64: 1, 128>}, {pipeline_mode = #tpu.pipeline_mode<synchronous>, transform_indices = @transform_7, window_bounds = array<i64: 128, 128>}, {pipeline_mode = #tpu.pipeline_mode<synchronous>, transform_indices = @transform_8, window_bounds = array<i64: 1, 128>}, {transform_indices = @transform_9, window_bounds = array<i64: 8, 1>}]} {
    %c0 = arith.constant 0 : index
    %c0_0 = arith.constant 0 : index
    %0 = vector.load %arg1[%c0, %c0_0] : memref<8x128xf32, #tpu.memory_space<vmem>>, vector<8x128xf32>
    %1 = arith.truncf %0 : vector<8x128xf32> to vector<8x128xbf16>
    %c0_1 = arith.constant 0 : index
    %c0_2 = arith.constant 0 : index
    %2 = vector.load %arg2[%c0_1, %c0_2] : memref<128x128xbf16, #tpu.memory_space<vmem>>, vector<128x128xbf16>
    %cst = arith.constant dense<0.000000e+00> : vector<8x128xf32>
    %3 = tpu.matmul %1, %2, %cst {dimension_numbers = #tpu.dot_dimension_numbers<[1], [0], [0], [1], [0, 0, 1, 1], [], []>} : vector<8x128xbf16>, vector<128x128xbf16>, vector<8x128xf32> -> vector<8x128xf32>
    %c0_3 = arith.constant 0 : index
    %c0_4 = arith.constant 0 : index
    %4 = vector.load %arg3[%c0_3, %c0_4] : memref<1x128xf32, #tpu.memory_space<vmem>>, vector<1x128xf32>
    %5 = vector.broadcast %4 : vector<1x128xf32> to vector<8x128xf32>
    %6 = arith.addf %3, %5 : vector<8x128xf32>
    %cst_5 = arith.constant 0.000000e+00 : f32
    %7 = vector.broadcast %cst_5 : f32 to vector<8x128xf32>
    %8 = arith.cmpf ogt, %6, %7 : vector<8x128xf32>
    %cst_6 = arith.constant 1.000000e-01 : f32
    %9 = vector.broadcast %cst_6 : f32 to vector<8x128xf32>
    %10 = arith.mulf %9, %6 : vector<8x128xf32>
    %11 = arith.select %8, %6, %10 : vector<8x128xi1>, vector<8x128xf32>
    %12 = arith.truncf %11 : vector<8x128xf32> to vector<8x128xbf16>
    %c0_7 = arith.constant 0 : index
    %c0_8 = arith.constant 0 : index
    %13 = vector.load %arg4[%c0_7, %c0_8] : memref<128x128xbf16, #tpu.memory_space<vmem>>, vector<128x128xbf16>
    %cst_9 = arith.constant dense<0.000000e+00> : vector<8x128xf32>
    %14 = tpu.matmul %12, %13, %cst_9 {dimension_numbers = #tpu.dot_dimension_numbers<[1], [0], [0], [1], [0, 0, 1, 1], [], []>} : vector<8x128xbf16>, vector<128x128xbf16>, vector<8x128xf32> -> vector<8x128xf32>
    %c0_10 = arith.constant 0 : index
    %c0_11 = arith.constant 0 : index
    %15 = vector.load %arg5[%c0_10, %c0_11] : memref<1x128xf32, #tpu.memory_space<vmem>>, vector<1x128xf32>
    %16 = vector.broadcast %15 : vector<1x128xf32> to vector<8x128xf32>
    %17 = arith.addf %14, %16 : vector<8x128xf32>
    %cst_12 = arith.constant 0.000000e+00 : f32
    %18 = vector.broadcast %cst_12 : f32 to vector<8x128xf32>
    %19 = arith.cmpf ogt, %17, %18 : vector<8x128xf32>
    %cst_13 = arith.constant 1.000000e-01 : f32
    %20 = vector.broadcast %cst_13 : f32 to vector<8x128xf32>
    %21 = arith.mulf %20, %17 : vector<8x128xf32>
    %22 = arith.select %19, %17, %21 : vector<8x128xi1>, vector<8x128xf32>
    %23 = arith.truncf %22 : vector<8x128xf32> to vector<8x128xbf16>
    %c0_14 = arith.constant 0 : index
    %c0_15 = arith.constant 0 : index
    %24 = vector.load %arg6[%c0_14, %c0_15] : memref<128x128xbf16, #tpu.memory_space<vmem>>, vector<128x128xbf16>
    %cst_16 = arith.constant dense<0.000000e+00> : vector<8x128xf32>
    %25 = tpu.matmul %23, %24, %cst_16 {dimension_numbers = #tpu.dot_dimension_numbers<[1], [0], [0], [1], [0, 0, 1, 1], [], []>} : vector<8x128xbf16>, vector<128x128xbf16>, vector<8x128xf32> -> vector<8x128xf32>
    %c0_17 = arith.constant 0 : index
    %c0_18 = arith.constant 0 : index
    %26 = vector.load %arg7[%c0_17, %c0_18] : memref<1x128xf32, #tpu.memory_space<vmem>>, vector<1x128xf32>
    %27 = vector.broadcast %26 : vector<1x128xf32> to vector<8x128xf32>
    %28 = arith.addf %25, %27 : vector<8x128xf32>
    %cst_19 = arith.constant 0.000000e+00 : f32
    %29 = vector.broadcast %cst_19 : f32 to vector<8x128xf32>
    %30 = arith.cmpf ogt, %28, %29 : vector<8x128xf32>
    %cst_20 = arith.constant 1.000000e-01 : f32
    %31 = vector.broadcast %cst_20 : f32 to vector<8x128xf32>
    %32 = arith.mulf %31, %28 : vector<8x128xf32>
    %33 = arith.select %30, %28, %32 : vector<8x128xi1>, vector<8x128xf32>
    %34 = arith.truncf %33 : vector<8x128xf32> to vector<8x128xbf16>
    %c0_21 = arith.constant 0 : index
    %c0_22 = arith.constant 0 : index
    %35 = vector.load %arg8[%c0_21, %c0_22] : memref<128x128xbf16, #tpu.memory_space<vmem>>, vector<128x128xbf16>
    %cst_23 = arith.constant dense<0.000000e+00> : vector<8x128xf32>
    %36 = tpu.matmul %34, %35, %cst_23 {dimension_numbers = #tpu.dot_dimension_numbers<[1], [0], [0], [1], [0, 0, 1, 1], [], []>} : vector<8x128xbf16>, vector<128x128xbf16>, vector<8x128xf32> -> vector<8x128xf32>
    %c0_24 = arith.constant 0 : index
    %c0_25 = arith.constant 0 : index
    %37 = vector.load %arg9[%c0_24, %c0_25] : memref<1x128xf32, #tpu.memory_space<vmem>>, vector<1x128xf32>
    %38 = vector.broadcast %37 : vector<1x128xf32> to vector<8x128xf32>
    %39 = arith.addf %36, %38 : vector<8x128xf32>
    %40 = vector.extract_strided_slice %39 {offsets = [0, 0], sizes = [8, 1], strides = [1, 1]} : vector<8x128xf32> to vector<8x1xf32>
    %c0_26 = arith.constant 0 : index
    %c0_27 = arith.constant 0 : index
    %41 = vector.load %arg10[%c0_26, %c0_27] : memref<8x1xf32, #tpu.memory_space<vmem>>, vector<8x1xf32>
    tpu.vector_store %arg10[%c0_26, %c0_27], %40 {strides = array<i32>} : memref<8x1xf32, #tpu.memory_space<vmem>>, vector<8x1xf32>,
    return
  }
  func.func @transform_0(%arg0: i32) -> (i32, i32) {
    %c0_i32 = arith.constant 0 : i32
    %c0_i32_0 = arith.constant 0 : i32
    return %arg0, %c0_i32 : i32, i32
  }
  func.func @transform_1(%arg0: i32) -> (i32, i32) {
    %c0_i32 = arith.constant 0 : i32
    %c0_i32_0 = arith.constant 0 : i32
    %c0_i32_1 = arith.constant 0 : i32
    return %c0_i32, %c0_i32_0 : i32, i32
  }
  func.func @transform_2(%arg0: i32) -> (i32, i32) {
    %c0_i32 = arith.constant 0 : i32
    %c0_i32_0 = arith.constant 0 : i32
    %c0_i32_1 = arith.constant 0 : i32
    return %c0_i32, %c0_i32_0 : i32, i32
  }
  func.func @transform_3(%arg0: i32) -> (i32, i32) {
    %c0_i32 = arith.constant 0 : i32
    %c0_i32_0 = arith.constant 0 : i32
    %c0_i32_1 = arith.constant 0 : i32
    return %c0_i32, %c0_i32_0 : i32, i32
  }
  func.func @transform_4(%arg0: i32) -> (i32, i32) {
    %c0_i32 = arith.constant 0 : i32
    %c0_i32_0 = arith.constant 0 : i32
    %c0_i32_1 = arith.constant 0 : i32
    return %c0_i32, %c0_i32_0 : i32, i32
  }
  func.func @transform_5(%arg0: i32) -> (i32, i32) {
    %c0_i32 = arith.constant 0 : i32
    %c0_i32_0 = arith.constant 0 : i32
    %c0_i32_1 = arith.constant 0 : i32
    return %c0_i32, %c0_i32_0 : i32, i32
  }
  func.func @transform_6(%arg0: i32) -> (i32, i32) {
    %c0_i32 = arith.constant 0 : i32
    %c0_i32_0 = arith.constant 0 : i32
    %c0_i32_1 = arith.constant 0 : i32
    return %c0_i32, %c0_i32_0 : i32, i32
  }
  func.func @transform_7(%arg0: i32) -> (i32, i32) {
    %c0_i32 = arith.constant 0 : i32
    %c0_i32_0 = arith.constant 0 : i32
    %c0_i32_1 = arith.constant 0 : i32
    return %c0_i32, %c0_i32_0 : i32, i32
  }
  func.func @transform_8(%arg0: i32) -> (i32, i32) {
    %c0_i32 = arith.constant 0 : i32
    %c0_i32_0 = arith.constant 0 : i32
    %c0_i32_1 = arith.constant 0 : i32
    return %c0_i32, %c0_i32_0 : i32, i32
  }
  func.func @transform_9(%arg0: i32) -> (i32, i32) {
    %c0_i32 = arith.constant 0 : i32
    %c0_i32_0 = arith.constant 0 : i32
    return %arg0, %c0_i32 : i32, i32
  }
}

</mosaic_0001>

<bundles_post_ra>
// kernel: value_network_forward.1
= control target key start
LH: loop header
LB: loop body
LE: loop exit
PB: predicated region body
PF: predicated region fallthrough
CT: control target
= control target key end

     0   :  { %14 = vsyncpa [#allocation3], 0  ;;  %s1006_s0 = inlined_call_operand.hbm [shape: f32[8,128], index: 0, kind: input, shape index: {}]   ;;  %s1007_s1 = inlined_call_operand.hbm [shape: bf16[128,128], index: 1, kind: input, shape index: {}]   ;;  %s1008_s2 = inlined_call_operand.vmem [shape: f32[1,128], index: 2, kind: input, shape index: {}]   ;;  %s1009_s3 = inlined_call_operand.hbm [shape: bf16[128,128], index: 3, kind: input, shape index: {}]   ;;  %s1010_s4 = inlined_call_operand.vmem [shape: f32[1,128], index: 4, kind: input, shape index: {}]   ;;  %s1011_s5 = inlined_call_operand.hbm [shape: bf16[128,128], index: 5, kind: input, shape index: {}]   ;;  %s1012_s6 = inlined_call_operand.vmem [shape: f32[1,128], index: 6, kind: input, shape index: {}]   ;;  %s1013_s7 = inlined_call_operand.hbm [shape: bf16[128,128], index: 7, kind: input, shape index: {}]   ;;  %s1014_s8 = inlined_call_operand.vmem [shape: f32[1,128], index: 8, kind: input, shape index: {}]   ;;  %s1015_s9 = inlined_call_operand.vmem [shape: f32[8,1], index: 9, kind: output, shape index: {}]  }
   0x1   :  { %15 = vsyncpa [#allocation5], 0 }
   0x2   :  { %16 = vsyncpa [#allocation8], 0  ;;  %s865_s30 = smov [#allocation4]  }
   0x3   :  { %s32_s10 = sshll.u32 %s865_s30, 4  ;;  %s33_s10 = int_to_ptr.vmem [resolvable:$true] %s32_s10 }
   0x4   :  { %s767_s11 = scalar_lea.vmem %s33_s10, 1024  ;;  %p772_p1 = scmp.lt.s32.totalorder %s33_s10, %s33_s10 }
   0x5   :  { %p768_p0 = scmp.ne.s32.totalorder %s33_s10, %s767_s11  ;;  %p773_p2 = scmp.lt.s32.totalorder %s767_s11, %s767_s11 }
   0x7   :  { %p774_p3 = por %p773_p2, %p772_p1 }
   0x9   :  { %p775_p4 = pnand %p774_p3, %p768_p0 }
   0xb   :  { %778 = shalt.err (!%p775_p4)
}
   0xc   :  { %s866_s12 = smov 64   ;;  %s867_s13 = smov 4  }
   0xd   :  { %38 = dma.hbm_to_vmem [thread:$0]  %s1007_s1, 1024, %s33_s10, [#allocation5], %s866_s12, %s866_s12, %s867_s13  }
   0xe   :  { %s868_s16 = smov [#allocation7]   ;;  %s869_s18 = smov [#allocation2]  }
   0xf   :  { %s60_s17 = sshll.u32 %s868_s16, 4  ;;  %s23_s19 = sshll.u32 %s869_s18, 4  ;;  %s61_s17 = int_to_ptr.vmem [resolvable:$true] %s60_s17  ;;  %s24_s19 = int_to_ptr.vmem [resolvable:$true] %s23_s19 }
  0x10   :  { %s787_s20 = scalar_lea.vmem %s61_s17, 1024  ;;  %p792_p6 = scmp.lt.s32.totalorder %s61_s17, %s61_s17 }
  0x11   :  { %p788_p5 = scmp.ne.s32.totalorder %s61_s17, %s787_s20  ;;  %p793_p7 = scmp.lt.s32.totalorder %s787_s20, %s787_s20 }
  0x13   :  { %p794_p8 = por %p793_p7, %p792_p6 }
  0x15   :  { %p795_p9 = pnand %p794_p8, %p788_p5 }
  0x17   :  { %798 = shalt.err (!%p795_p9)
}
  0x18   :  { %66 = dma.hbm_to_vmem [thread:$0]  %s1011_s5, 1024, %s61_s17, [#allocation8], %s866_s12, %s866_s12, %s867_s13  }
  0x19   :  { %s807_s1 = scalar_lea.vmem %s24_s19, 128  ;;  %p812_p11 = scmp.lt.s32.totalorder %s24_s19, %s24_s19 }
  0x1a   :  { %p808_p10 = scmp.ne.s32.totalorder %s24_s19, %s807_s1  ;;  %p813_p12 = scmp.lt.s32.totalorder %s807_s1, %s807_s1 }
  0x1c   :  { %p814_p13 = por %p813_p12, %p812_p11 }
  0x1e   :  { %p815_p0 = pnand %p814_p13, %p808_p10 }
  0x20   :  { %818 = shalt.err (!%p815_p0)
}
  0x21   :  { %26 = dma.hbm_to_vmem [thread:$0]  %s1006_s0, 128, %s24_s19, [#allocation3]  }
  0x22   :  { %s870_s25 = smov [#allocation6]   ;;  %s871_s27 = smov [#allocation9]  }
  0x23   :  { %s46_s26 = sshll.u32 %s870_s25, 4  ;;  %s74_s28 = sshll.u32 %s871_s27, 4  ;;  %s47_s26 = int_to_ptr.vmem [resolvable:$true] %s46_s26  ;;  %s75_s28 = int_to_ptr.vmem [resolvable:$true] %s74_s28 }
  0x24   :  { %s827_s29 = scalar_lea.vmem %s47_s26, 1024  ;;  %p832_p2 = scmp.lt.s32.totalorder %s47_s26, %s47_s26 }
  0x25   :  { %p828_p1 = scmp.ne.s32.totalorder %s47_s26, %s827_s29  ;;  %p833_p3 = scmp.lt.s32.totalorder %s827_s29, %s827_s29 }
  0x27   :  { %p834_p4 = por %p833_p3, %p832_p2 }
  0x29   :  { %p835_p5 = pnand %p834_p4, %p828_p1 }
  0x2b   :  { %838 = shalt.err (!%p835_p5)
}
  0x2c   :  { %52 = dma.hbm_to_vmem [thread:$0]  %s1009_s3, 1024, %s47_s26, [#allocation5], %s866_s12, %s866_s12, %s867_s13  }
  0x2d   :  { %s847_s0 = scalar_lea.vmem %s75_s28, 1024  ;;  %p852_p7 = scmp.lt.s32.totalorder %s75_s28, %s75_s28 }
  0x2e   :  { %p848_p6 = scmp.ne.s32.totalorder %s75_s28, %s847_s0  ;;  %p853_p8 = scmp.lt.s32.totalorder %s847_s0, %s847_s0 }
  0x30   :  { %p854_p9 = por %p853_p8, %p852_p7 }
  0x32   :  { %p855_p10 = pnand %p854_p9, %p848_p6 }
  0x34   :  { %858 = shalt.err (!%p855_p10)
}
  0x35   :  { %80 = dma.hbm_to_vmem [thread:$0]  %s1013_s7, 1024, %s75_s28, [#allocation8], %s866_s12, %s866_s12, %s867_s13  }
  0x36   :  { %859 = dma.done.wait [#allocation3], 128  }
  0x37   :  { %860 = vsyncadd [#allocation3], 4294967168 }
  0x38   :  { %861 = dma.done.wait [#allocation5], 2048  }
  0x39   :  { %862 = vsyncadd [#allocation5], 4294965248 }
  0x3a   :  { %863 = dma.done.wait [#allocation8], 2048  }
  0x3b   :  { %864 = vsyncadd [#allocation8], 4294965248  ;;  %v872_v0 = vmov 0.0   ;;  %vm873_vm0 = vmmov 0   ;;  %v727_v1 = vld [vmem:[#allocation4 + $0x38] sm:$0xff]   ;;  %v728_v2 = vld [vmem:[#allocation4 + $0x30] sm:$0xff]  }
  0x3c   :  { %638 = vmatprep.subr.bf16.mxu0 %v872_v0  ;;  %654 = vmatprep.mubr.msk.bf16.mxu0 %vm873_vm0, %v872_v0  ;;  %v729_v3 = vld [vmem:[#allocation4 + $0x28] sm:$0xff]   ;;  %v735_v4 = vld [vmem:[#allocation6 + $0x38] sm:$0xff]   ;;  %v730_v5 = vld [vmem:[#allocation4 + $0x20] sm:$0xff]   ;;  %vm557_vm4 = vcmask 7168  }
  0x3d   :  { %658 = vmatprep.subr.bf16.mxu1 %v872_v0  ;;  %674 = vmatprep.mubr.msk.bf16.mxu1 %vm873_vm0, %v872_v0  ;;  %v736_v6 = vld [vmem:[#allocation6 + $0x30] sm:$0xff]   ;;  %v731_v7 = vld [vmem:[#allocation4 + $0x18] sm:$0xff]   ;;  %v737_v8 = vld [vmem:[#allocation6 + $0x28] sm:$0xff]  }
  0x3e   :  { %639 = vmatpush3.bf16.msra.mxu0 %v727_v1  ;;  %659 = vmatpush3.bf16.msra.mxu1 %v735_v4  ;;  %v732_v9 = vld [vmem:[#allocation4 + $0x10] sm:$0xff]   ;;  %v738_v10 = vld [vmem:[#allocation6 + $0x20] sm:$0xff]   ;;  %v733_v11 = vld [vmem:[#allocation4 + $0x8] sm:$0xff]  }
  0x3f   :  { %640 = vmatprep.subr.bf16.mxu0 %v872_v0  ;;  %660 = vmatprep.subr.bf16.mxu1 %v872_v0  ;;  %v739_v12 = vld [vmem:[#allocation6 + $0x18] sm:$0xff]   ;;  %v734_v13 = vld [vmem:[#allocation4] sm:$0xff]   ;;  %v740_v15 = vld [vmem:[#allocation6 + $0x10] sm:$0xff]  }
  0x40   :  { %v99_v14 = vld [vmem:[#allocation2] sm:$0xff]  ;;  %v741_v17 = vld [vmem:[#allocation6 + $0x8] sm:$0xff]   ;;  %v742_v18 = vld [vmem:[#allocation6] sm:$0xff]  }
  0x41   :  { %v100_v16 = vpack.c.bf16 %v99_v14, %v99_v14  ;;  %v743_v19 = vld [vmem:[#allocation7 + $0x38] sm:$0xff]   ;;  %v744_v20 = vld [vmem:[#allocation7 + $0x30] sm:$0xff]   ;;  %v745_v21 = vld [vmem:[#allocation7 + $0x28] sm:$0xff]  }
  0x42   :  { %641 = vmatpush3.bf16.msra.mxu0 %v728_v2  ;;  %661 = vmatpush3.bf16.msra.mxu1 %v736_v6  ;;  %v746_v22 = vld [vmem:[#allocation7 + $0x20] sm:$0xff]   ;;  %v747_v23 = vld [vmem:[#allocation7 + $0x18] sm:$0xff]   ;;  %v748_v24 = vld [vmem:[#allocation7 + $0x10] sm:$0xff]  }
  0x43   :  { %642 = vmatprep.subr.bf16.mxu0 %v872_v0  ;;  %662 = vmatprep.subr.bf16.mxu1 %v872_v0  ;;  %v566_v25 = vld [vmem:[%s1008_s2] ss:$0 sm:$0xff]  ;;  %v749_v34 = vld [vmem:[#allocation7 + $0x8] sm:$0xff]   ;;  %v750_v35 = vld [vmem:[#allocation7] sm:$0xff]  }
  0x44   :  { %v751_v36 = vld [vmem:[#allocation9 + $0x38] sm:$0xff]   ;;  %v752_v37 = vld [vmem:[#allocation9 + $0x30] sm:$0xff]   ;;  %v753_v38 = vld [vmem:[#allocation9 + $0x28] sm:$0xff]  }
  0x45   :  { %v754_v39 = vld [vmem:[#allocation9 + $0x20] sm:$0xff]   ;;  %v755_v40 = vld [vmem:[#allocation9 + $0x18] sm:$0xff]   ;;  %v756_v41 = vld [vmem:[#allocation9 + $0x10] sm:$0xff]  }
  0x46   :  { %643 = vmatpush3.bf16.msra.mxu0 %v729_v3  ;;  %663 = vmatpush3.bf16.msra.mxu1 %v737_v8  ;;  %v575_v42 = vld [vmem:[%s1010_s4] ss:$0 sm:$0xff]  ;;  %v757_v51 = vld [vmem:[#allocation9 + $0x8] sm:$0xff]   ;;  %v758_v52 = vld [vmem:[#allocation9] sm:$0xff]  }
  0x47   :  { %644 = vmatprep.subr.bf16.mxu0 %v872_v0  ;;  %664 = vmatprep.subr.bf16.mxu1 %v872_v0  ;;  %v584_v53 = vld [vmem:[%s1012_s6] ss:$0 sm:$0xff] }
  0x48   :  { %v593_v62 = vld [vmem:[%s1014_s8] ss:$0 sm:$0xff] }
  0x4a   :  { %645 = vmatpush3.bf16.msra.mxu0 %v730_v5  ;;  %665 = vmatpush3.bf16.msra.mxu1 %v738_v10 }
  0x4b   :  { %646 = vmatprep.subr.bf16.mxu0 %v872_v0  ;;  %666 = vmatprep.subr.bf16.mxu1 %v872_v0 }
  0x4e   :  { %647 = vmatpush3.bf16.msra.mxu0 %v731_v7  ;;  %667 = vmatpush3.bf16.msra.mxu1 %v739_v12 }
  0x4f   :  { %648 = vmatprep.subr.bf16.mxu0 %v872_v0  ;;  %668 = vmatprep.subr.bf16.mxu1 %v872_v0 }
  0x52   :  { %649 = vmatpush3.bf16.msra.mxu0 %v732_v9  ;;  %669 = vmatpush3.bf16.msra.mxu1 %v740_v15 }
  0x53   :  { %650 = vmatprep.subr.bf16.mxu0 %v872_v0  ;;  %670 = vmatprep.subr.bf16.mxu1 %v872_v0 }
  0x56   :  { %651 = vmatpush3.bf16.msra.mxu0 %v733_v11  ;;  %671 = vmatpush3.bf16.msra.mxu1 %v741_v17 }
  0x57   :  { %652 = vmatprep.subr.bf16.mxu0 %v872_v0  ;;  %672 = vmatprep.subr.bf16.mxu1 %v872_v0 }
  0x5a   :  { %653 = vmatpush3.bf16.msra.mxu0 %v734_v13  ;;  %673 = vmatpush3.bf16.msra.mxu1 %v742_v18 }
  0x5b   :  { %678 = vmatprep.subr.bf16.mxu0 %v872_v0  ;;  %698 = vmatprep.subr.bf16.mxu1 %v872_v0 }
  0x5d   :  { %655 = vmatmul.mubr.bf16.vlgmr.msra.gmra.mxu0 %v100_v16 }
  0x5e   :  { %694 = vmatprep.mubr.msk.bf16.mxu0 %vm873_vm0, %v872_v0  ;;  %679 = vmatpush3.bf16.msra.mxu0 %v743_v19 }
  0x5f   :  { %680 = vmatprep.subr.bf16.mxu0 %v872_v0 }
  0x62   :  { %681 = vmatpush3.bf16.msra.mxu0 %v744_v20 }
  0x63   :  { %682 = vmatprep.subr.bf16.mxu0 %v872_v0 }
  0x66   :  { %683 = vmatpush3.bf16.msra.mxu0 %v745_v21 }
  0x67   :  { %684 = vmatprep.subr.bf16.mxu0 %v872_v0 }
  0x6a   :  { %685 = vmatpush3.bf16.msra.mxu0 %v746_v22 }
  0x6b   :  { %686 = vmatprep.subr.bf16.mxu0 %v872_v0 }
  0x6e   :  { %687 = vmatpush3.bf16.msra.mxu0 %v747_v23 }
  0x6f   :  { %688 = vmatprep.subr.bf16.mxu0 %v872_v0 }
  0x72   :  { %689 = vmatpush3.bf16.msra.mxu0 %v748_v24 }
  0x73   :  { %690 = vmatprep.subr.bf16.mxu0 %v872_v0 }
  0x76   :  { %691 = vmatpush3.bf16.msra.mxu0 %v749_v34 }
  0x77   :  { %692 = vmatprep.subr.bf16.mxu0 %v872_v0 }
  0x7a   :  { %693 = vmatpush3.bf16.msra.mxu0 %v750_v35 }
 0x11d   :  { %v206_v26 = vpop.f32.mrf.mxu0 }
 0x11e   :  { %v207_v27 = vadd.f32 %v566_v25, %v206_v26 }
 0x11f   :  { %v656_v28 = vpop.f32.mrf.mxu0 }
 0x120   :  { %vm212_vm1 = vcmp.gt.f32.partialorder %v207_v27, 0.0  ;;  %v213_v29 = vmul.f32 0.1, %v207_v27 }
 0x121   :  { %v209_v30 = vpop.f32.mrf.mxu0 }
 0x122   :  { %v214_v31 = vsel %vm212_vm1, %v207_v27, %v213_v29 }
 0x123   :  { %v657_v32 = vpop.f32.mrf.mxu0  ;;  %v215_v33 = vpack.c.bf16 %v214_v31, %v214_v31 }
 0x125   :  { %675 = vmatmul.mubr.bf16.vlgmr.msra.gmra.mxu1 %v215_v33 }
 0x126   :  { %714 = vmatprep.mubr.msk.bf16.mxu1 %vm873_vm0, %v872_v0  ;;  %699 = vmatpush3.bf16.msra.mxu1 %v751_v36 }
 0x127   :  { %700 = vmatprep.subr.bf16.mxu1 %v872_v0 }
 0x12a   :  { %701 = vmatpush3.bf16.msra.mxu1 %v752_v37 }
 0x12b   :  { %702 = vmatprep.subr.bf16.mxu1 %v872_v0 }
 0x12e   :  { %703 = vmatpush3.bf16.msra.mxu1 %v753_v38 }
 0x12f   :  { %704 = vmatprep.subr.bf16.mxu1 %v872_v0 }
 0x132   :  { %705 = vmatpush3.bf16.msra.mxu1 %v754_v39 }
 0x133   :  { %706 = vmatprep.subr.bf16.mxu1 %v872_v0 }
 0x136   :  { %707 = vmatpush3.bf16.msra.mxu1 %v755_v40 }
 0x137   :  { %708 = vmatprep.subr.bf16.mxu1 %v872_v0 }
 0x13a   :  { %709 = vmatpush3.bf16.msra.mxu1 %v756_v41 }
 0x13b   :  { %710 = vmatprep.subr.bf16.mxu1 %v872_v0 }
 0x13e   :  { %711 = vmatpush3.bf16.msra.mxu1 %v757_v51 }
 0x13f   :  { %712 = vmatprep.subr.bf16.mxu1 %v872_v0 }
 0x142   :  { %713 = vmatpush3.bf16.msra.mxu1 %v758_v52 }
 0x1e5   :  { %v321_v43 = vpop.f32.mrf.mxu1 }
 0x1e6   :  { %v322_v44 = vadd.f32 %v575_v42, %v321_v43 }
 0x1e7   :  { %v676_v45 = vpop.f32.mrf.mxu1 }
 0x1e8   :  { %vm327_vm2 = vcmp.gt.f32.partialorder %v322_v44, 0.0  ;;  %v328_v46 = vmul.f32 0.1, %v322_v44 }
 0x1e9   :  { %v324_v47 = vpop.f32.mrf.mxu1 }
 0x1ea   :  { %v329_v48 = vsel %vm327_vm2, %v322_v44, %v328_v46 }
 0x1eb   :  { %v330_v49 = vpack.c.bf16 %v329_v48, %v329_v48  ;;  %v677_v50 = vpop.f32.mrf.mxu1 }
 0x1ed   :  { %695 = vmatmul.mubr.bf16.vlgmr.msra.gmra.mxu0 %v330_v49 }
 0x2ad   :  { %v436_v54 = vpop.f32.mrf.mxu0 }
 0x2ae   :  { %v437_v55 = vadd.f32 %v584_v53, %v436_v54 }
 0x2af   :  { %v696_v56 = vpop.f32.mrf.mxu0 }
 0x2b0   :  { %vm442_vm3 = vcmp.gt.f32.partialorder %v437_v55, 0.0  ;;  %v443_v57 = vmul.f32 0.1, %v437_v55 }
 0x2b1   :  { %v439_v58 = vpop.f32.mrf.mxu0 }
 0x2b2   :  { %v444_v59 = vsel %vm442_vm3, %v437_v55, %v443_v57 }
 0x2b3   :  { %v445_v60 = vpack.c.bf16 %v444_v59, %v444_v59  ;;  %v697_v61 = vpop.f32.mrf.mxu0 }
 0x2b5   :  { %715 = vmatmul.mubr.bf16.vlgmr.msra.gmra.mxu1 %v445_v60 }
 0x375   :  { %v551_v63 = vpop.f32.mrf.mxu1 }
 0x376   :  { %v552_v0 = vadd.f32 %v593_v62, %v551_v63 }
 0x377   :  { %v716_v1 = vpop.f32.mrf.mxu1 }
 0x378   :  { %558 = vst.msk [vmem:[%s1015_s9] sm:$0xff] %vm557_vm4, %v552_v0 }
 0x379   :  { %v554_v2 = vpop.f32.mrf.mxu1 }
 0x37b   :  { %v717_v3 = vpop.f32.mrf.mxu1 }
 0x37c   :  { %563 = vsyncpa [#allocation3], 1 }
 0x37d   :  { %564 = vsyncpa [#allocation5], 1 }
 0x37e   :  { %565 = vsyncpa [#allocation8], 1 }

</bundles_post_ra>
